<compile_context>
chip_gen: v5e
topology: v5e:2x2
jax: 0.10.0
libtpu: 0.0.40
codegen_flags: <defaults>
</compile_context>

<pallas_src>
import functools

import numpy as np
import jax
import jax.numpy as jnp
from jax.experimental import pallas as pl
from jax.experimental.pallas import tpu as pltpu


# ---------------------------------------------------------------------------
# Kernel
#   q_ref, k_ref   : (1, TN, D)  I/O dtype  (interleaved real/imag pairs)
#   idx_ref        : (1, TN, C)  f32 spatial positions
#   f_ref          : (C, D)      f32 interleaved frequency table
#                                f[c, 2p] = f[c, 2p+1] = freq of pair p for
#                                channel c (0 elsewhere / on pad pairs)
#   qo_ref, ko_ref : (1, TN, D)  I/O dtype
# ---------------------------------------------------------------------------
def _rope_kernel(q_ref, k_ref, idx_ref, f_ref, qo_ref, ko_ref):
    f = f_ref[...]                                   # (C, D) f32
    C, D = f.shape
    idx = idx_ref[0].astype(jnp.float32)             # (TN, C) f32

    # phase_il[n, d] = sum_c idx[n, c] * f[c, d]   (already pair-duplicated)
    phase = idx[:, 0:1] * f[0:1, :]
    for c in range(1, C):
        phase = phase + idx[:, c:c + 1] * f[c:c + 1, :]

    cos = jnp.cos(phase)                              # (TN, D)  EUP
    sin = jnp.sin(phase)                              # (TN, D)  EUP

    # (1, D) lane-parity masks (broadcast over sublanes for free):
    #   even lanes hold Re, odd lanes hold Im of each complex pair.
    lane = jax.lax.broadcasted_iota(jnp.int32, (1, D), 1)
    is_even = (lane % 2) == 0
    neg_even = jnp.where(is_even, -1.0, 0.0).astype(jnp.float32)   # -1 on even, 0 on odd
    pos_odd = jnp.where(is_even, 0.0, 1.0).astype(jnp.float32)     #  0 on even, 1 on odd
    s_even = sin * neg_even                           # -sin on even lanes, 0 on odd
    s_odd = sin * pos_odd                             # +sin on odd lanes,  0 on even

    def rotate(x_ref, o_ref):
        x = x_ref[...].astype(jnp.float32)            # (1, TN, D)
        # Adjacent-lane partners via XLU rotations; wrap-around lanes are
        # multiplied by a zero mask, so no explicit select is needed.
        up = pltpu.roll(x, D - 1, axis=2)             # x[j + 1]  (used on even lanes)
        dn = pltpu.roll(x, 1, axis=2)                 # x[j - 1]  (used on odd lanes)
        # TODO(synk): for D > 128 a per-128-lane-group roll would avoid
        # cross-vreg lane carries; full-D roll is kept for layout simplicity.
        o_ref[...] = (x * cos + up * s_even + dn * s_odd).astype(o_ref.dtype)

    rotate(q_ref, qo_ref)
    rotate(k_ref, ko_ref)


# ---------------------------------------------------------------------------
# Generation-aware VMEM budgeting / tiling
# ---------------------------------------------------------------------------
def _vmem_limit_bytes() -> int:
    cap = 64 * 1024 * 1024                            # conservative fallback (v7x per-TC)
    try:
        info = pltpu.get_tpu_info()
        cap = int(getattr(info, "vmem_capacity_bytes", cap)) or cap
    except Exception:
        pass
    # ~96 MiB scoped on 128-MiB parts (v5e/v6e), ~48 MiB on v7x (64 MiB/TC).
    return min(cap * 3 // 4, 96 * 1024 * 1024)


def _pick_token_tile(n_tokens: int, d: int, itemsize: int) -> int:
    # Leave half of the scoped limit for Mosaic internal scratch + in-kernel
    # f32 temporaries the estimate below cannot see exactly.
    budget = _vmem_limit_bytes() // 2
    # Per-token bytes: double-buffered q/k in + out windows  +  ~6 f32 temps.
    per_token = 2 * 4 * d * itemsize + 24 * d
    tn = int(min(budget // max(per_token, 1), 8192, n_tokens))
    if tn < n_tokens:
        tn = max(8, (tn // 8) * 8)                    # sublane-friendly
        tn = min(tn, n_tokens)
    return max(1, tn)


# ---------------------------------------------------------------------------
# pallas_call wrapper
#   q, k    : [B, N, D]
#   idx     : [B, N, C] f32 spatial positions
#   freq_il : [C, D]    f32 interleaved frequency table
# ---------------------------------------------------------------------------
def rotary_rope_pallas(q, k, idx, freq_il, *, token_tile=None, donate=False):
    B, N, D = q.shape
    C = idx.shape[-1]
    assert k.shape == (B, N, D)
    assert idx.shape == (B, N, C)
    assert freq_il.shape == (C, D)

    tn = token_tile or _pick_token_tile(N, D, q.dtype.itemsize)
    # v7x megacore: make sure the parallel grid has >= 2 steps when possible
    # so both TensorCores get work.
    if B * pl.cdiv(N, tn) < 2 and N > 8:
        tn = min(tn, max(8, (((N + 1) // 2) + 7) // 8 * 8))
    grid = (pl.cdiv(N, tn), B)

    x_spec = pl.BlockSpec((1, tn, D), lambda n, b: (b, n, 0))
    i_spec = pl.BlockSpec((1, tn, C), lambda n, b: (b, n, 0))
    f_spec = pl.BlockSpec((C, D), lambda n, b: (0, 0))     # constant -> fetched once

    io_bytes = (2 * (q.size * q.dtype.itemsize + k.size * k.dtype.itemsize)
                + idx.size * 4 + freq_il.size * 4)
    cost = pl.CostEstimate(flops=(8 + 2 * C) * B * N * D,
                           transcendentals=2 * B * N * D,
                           bytes_accessed=io_bytes)

    return pl.pallas_call(
        _rope_kernel,
        out_shape=(jax.ShapeDtypeStruct((B, N, D), q.dtype),
                   jax.ShapeDtypeStruct((B, N, D), k.dtype)),
        grid_spec=pltpu.PrefetchScalarGridSpec(
            num_scalar_prefetch=0,
            grid=grid,
            in_specs=[x_spec, x_spec, i_spec, f_spec],
            out_specs=[x_spec, x_spec],
        ),
        compiler_params=pltpu.CompilerParams(
            dimension_semantics=("parallel", "parallel"),
            vmem_limit_bytes=_vmem_limit_bytes()),
        cost_estimate=cost,
        # Only useful if the caller actually donates q/k (e.g. jit donation);
        # otherwise XLA inserts defensive copies, so it is opt-in.
        input_output_aliases=({0: 0, 1: 1} if donate else {}),
    )(q, k, idx, freq_il)


# ---------------------------------------------------------------------------
# Module equivalent
# ---------------------------------------------------------------------------
class RotaryPositionEmbedder:
    def __init__(self, hidden_size: int, in_channels: int = 3):
        assert hidden_size % 2 == 0, "Hidden size must be divisible by 2"
        self.hidden_size = hidden_size
        self.in_channels = in_channels
        freq_dim = hidden_size // in_channels // 2
        freqs = np.arange(freq_dim, dtype=np.float32) / freq_dim
        self.freqs = jnp.asarray(1.0 / (10000.0 ** freqs))
        self._freq_table_cache = {}

    def _freq_table(self, C: int, D: int):
        """[C, D] interleaved frequency table: F[c, 2p] = F[c, 2p+1] = freq of
        pair p if channel c owns it, else 0 (pad pairs -> cos=1, sin=0)."""
        key = (C, D)
        if key not in self._freq_table_cache:
            fd = int(self.freqs.shape[0])
            fr = np.asarray(self.freqs, np.float32)
            half = np.zeros((C, D // 2), np.float32)
            for c in range(C):
                lo = c * fd
                if lo >= D // 2:
                    break
                hi = min(lo + fd, D // 2)
                half[c, lo:hi] = fr[: hi - lo]
            self._freq_table_cache[key] = jnp.asarray(np.repeat(half, 2, axis=1))
        return self._freq_table_cache[key]

    def __call__(self, q, k, indices=None):
        # q, k: [..., N, D]; indices: [N, C] or [..., N, C]
        *lead, N, D = q.shape
        assert D == self.hidden_size
        B = int(np.prod(lead)) if lead else 1

        if indices is None:
            # TODO(synk): torch's indices=None path is ill-defined for batched q;
            # use per-token arange positions shared across the batch instead.
            idx = jnp.broadcast_to(
                jnp.arange(N, dtype=jnp.float32)[None, :, None], (B, N, 1))
        else:
            idx = jnp.asarray(indices, jnp.float32)
            if idx.ndim == 2:                       # [N, C], shared across batch
                idx = jnp.broadcast_to(idx[None], (B,) + idx.shape)
            else:                                   # [..., N, C] matching q's leading dims
                idx = idx.reshape((-1,) + idx.shape[-2:])
                assert idx.shape[0] == B, "indices leading dims must match q"

        C = idx.shape[-1]
        freq_il = self._freq_table(C, D)

        qb = q.reshape((B, N, D))
        kb = k.reshape((B, N, D))
        q_emb, k_emb = rotary_rope_pallas(qb, kb, idx, freq_il)
        return q_emb.reshape(q.shape), k_emb.reshape(k.shape)


# ---------------------------------------------------------------------------
# Pure-JAX reference (mirrors torch view_as_complex / view_as_real math).
#   indices: [N, C] shared across batch.
# ---------------------------------------------------------------------------
def _rope_ref(q, k, indices, freqs, hidden_size):
    ind = indices.reshape(-1).astype(jnp.float32)
    ph = jnp.outer(ind, freqs).reshape(indices.shape[0], -1)     # [N, C*freq_dim]
    pad = hidden_size // 2 - ph.shape[-1]
    cos = jnp.cos(ph)
    sin = jnp.sin(ph)
    if pad > 0:
        cos = jnp.concatenate([cos, jnp.ones((ph.shape[0], pad), jnp.float32)], -1)
        sin = jnp.concatenate([sin, jnp.zeros((ph.shape[0], pad), jnp.float32)], -1)

    def rot(x):
        xf = x.astype(jnp.float32)
        xe, xo = xf[..., 0::2], xf[..., 1::2]
        re = xe * cos - xo * sin
        im = xe * sin + xo * cos
        return jnp.stack([re, im], axis=-1).reshape(x.shape).astype(x.dtype)

    return rot(q), rot(k)


if __name__ == "__main__":
    B, N = 2, 16
    hidden_size = 128          # D (multiple of 128 -> lane-dense I/O)
    in_channels = 3            # freq_dim = 128 // 3 // 2 = 21 -> 63 pairs, padded to 64

    key = jax.random.PRNGKey(0)
    kq, kk, ki = jax.random.split(key, 3)
    q = jax.random.normal(kq, (B, N, hidden_size), dtype=jnp.float32)
    k = jax.random.normal(kk, (B, N, hidden_size), dtype=jnp.float32)
    # spatial positions (e.g. voxel coords), shared across batch: [N, C]
    indices = jax.random.randint(ki, (N, in_channels), 0, 16).astype(jnp.float32)

    rope = RotaryPositionEmbedder(hidden_size, in_channels)

    # ---- f32 path ----
    q_emb, k_emb = rope(q, k, indices)
    jax.block_until_ready((q_emb, k_emb))
    q_ref, k_ref = _rope_ref(q, k, indices, rope.freqs, hidden_size)
    assert np.allclose(np.asarray(q_emb), np.asarray(q_ref), atol=1e-4, rtol=1e-4)
    assert np.allclose(np.asarray(k_emb), np.asarray(k_ref), atol=1e-4, rtol=1e-4)

    # ---- bf16 path (I/O stays bf16; math in f32 inside the kernel) ----
    q_bf, k_bf = q.astype(jnp.bfloat16), k.astype(jnp.bfloat16)
    q_emb_bf, k_emb_bf = rope(q_bf, k_bf, indices)
    jax.block_until_ready((q_emb_bf, k_emb_bf))
    assert q_emb_bf.dtype == jnp.bfloat16 and k_emb_bf.dtype == jnp.bfloat16
    q_ref_bf, k_ref_bf = _rope_ref(q_bf, k_bf, indices, rope.freqs, hidden_size)
    assert np.allclose(np.asarray(q_emb_bf.astype(jnp.float32)),
                       np.asarray(q_ref_bf.astype(jnp.float32)), atol=2e-2, rtol=2e-2)
    assert np.allclose(np.asarray(k_emb_bf.astype(jnp.float32)),
                       np.asarray(k_ref_bf.astype(jnp.float32)), atol=2e-2, rtol=2e-2)

    # ---- indices=None fallback (per-token arange shared across batch) ----
    q0, k0 = rope(q, k, None)
    jax.block_until_ready((q0, k0))
    idx0 = jnp.arange(N, dtype=jnp.float32)[:, None]
    q0_ref, k0_ref = _rope_ref(q, k, idx0, rope.freqs, hidden_size)
    assert np.allclose(np.asarray(q0), np.asarray(q0_ref), atol=1e-4, rtol=1e-4)
    assert np.allclose(np.asarray(k0), np.asarray(k0_ref), atol=1e-4, rtol=1e-4)

    print("KERNEL_OK")
</pallas_src>

<mosaic_0001>
module attributes {stable_mosaic.version = 11 : i64} {
  func.func @_rope_kernel(%arg0: i32, %arg1: i32, %arg2: memref<1x16x128xf32, #tpu.memory_space<vmem>>, %arg3: memref<1x16x128xf32, #tpu.memory_space<vmem>>, %arg4: memref<1x16x3xf32, #tpu.memory_space<vmem>>, %arg5: memref<3x128xf32, #tpu.memory_space<vmem>>, %arg6: memref<1x16x128xf32, #tpu.memory_space<vmem>>, %arg7: memref<1x16x128xf32, #tpu.memory_space<vmem>>) attributes {dimension_semantics = [#tpu.dimension_semantics<parallel>, #tpu.dimension_semantics<parallel>], iteration_bounds = array<i64: 1, 2>, scalar_prefetch = 0 : i64, scratch_operands = 0 : i64, tpu.core_type = #tpu.core_type<tc>, window_params = [{transform_indices = @transform_0, window_bounds = array<i64: 1, 16, 128>}, {transform_indices = @transform_1, window_bounds = array<i64: 1, 16, 128>}, {transform_indices = @transform_2, window_bounds = array<i64: 1, 16, 3>}, {pipeline_mode = #tpu.pipeline_mode<synchronous>, transform_indices = @transform_3, window_bounds = array<i64: 3, 128>}, {transform_indices = @transform_4, window_bounds = array<i64: 1, 16, 128>}, {transform_indices = @transform_5, window_bounds = array<i64: 1, 16, 128>}]} {
    %c0 = arith.constant 0 : index
    %c0_0 = arith.constant 0 : index
    %0 = vector.load %arg5[%c0, %c0_0] : memref<3x128xf32, #tpu.memory_space<vmem>>, vector<3x128xf32>
    %c0_1 = arith.constant 0 : index
    %c0_2 = arith.constant 0 : index
    %c0_3 = arith.constant 0 : index
    %1 = vector.load %arg4[%c0_1, %c0_2, %c0_3] : memref<1x16x3xf32, #tpu.memory_space<vmem>>, vector<1x16x3xf32>
    %2 = vector.shape_cast %1 : vector<1x16x3xf32> to vector<16x3xf32>
    %3 = vector.extract_strided_slice %2 {offsets = [0, 0], sizes = [16, 1], strides = [1, 1]} : vector<16x3xf32> to vector<16x1xf32>
    %4 = vector.extract_strided_slice %0 {offsets = [0, 0], sizes = [1, 128], strides = [1, 1]} : vector<3x128xf32> to vector<1x128xf32>
    %5 = vector.broadcast %3 : vector<16x1xf32> to vector<16x128xf32>
    %6 = vector.broadcast %4 : vector<1x128xf32> to vector<16x128xf32>
    %7 = arith.mulf %5, %6 : vector<16x128xf32>
    %8 = vector.extract_strided_slice %2 {offsets = [0, 1], sizes = [16, 1], strides = [1, 1]} : vector<16x3xf32> to vector<16x1xf32>
    %9 = vector.extract_strided_slice %0 {offsets = [1, 0], sizes = [1, 128], strides = [1, 1]} : vector<3x128xf32> to vector<1x128xf32>
    %10 = vector.broadcast %8 : vector<16x1xf32> to vector<16x128xf32>
    %11 = vector.broadcast %9 : vector<1x128xf32> to vector<16x128xf32>
    %12 = arith.mulf %10, %11 : vector<16x128xf32>
    %13 = arith.addf %7, %12 : vector<16x128xf32>
    %14 = vector.extract_strided_slice %2 {offsets = [0, 2], sizes = [16, 1], strides = [1, 1]} : vector<16x3xf32> to vector<16x1xf32>
    %15 = vector.extract_strided_slice %0 {offsets = [2, 0], sizes = [1, 128], strides = [1, 1]} : vector<3x128xf32> to vector<1x128xf32>
    %16 = vector.broadcast %14 : vector<16x1xf32> to vector<16x128xf32>
    %17 = vector.broadcast %15 : vector<1x128xf32> to vector<16x128xf32>
    %18 = arith.mulf %16, %17 : vector<16x128xf32>
    %19 = arith.addf %13, %18 : vector<16x128xf32>
    %20 = math.cos %19 : vector<16x128xf32>
    %21 = math.sin %19 : vector<16x128xf32>
    %22 = tpu.iota {dimensions = array<i32: 1>} : vector<1x128xi32>
    %c2_i32 = arith.constant 2 : i32
    %c0_i32 = arith.constant 0 : i32
    %23 = arith.cmpi eq, %c2_i32, %c0_i32 : i32
    %c1_i32 = arith.constant 1 : i32
    %24 = arith.select %23, %c1_i32, %c2_i32 : i32
    %25 = vector.broadcast %24 : i32 to vector<1x128xi32>
    %26 = arith.remsi %22, %25 : vector<1x128xi32>
    %c0_i32_4 = arith.constant 0 : i32
    %27 = vector.broadcast %c0_i32_4 : i32 to vector<1x128xi32>
    %28 = arith.cmpi ne, %26, %27 : vector<1x128xi32>
    %c0_i32_5 = arith.constant 0 : i32
    %29 = vector.broadcast %c0_i32_5 : i32 to vector<1x128xi32>
    %30 = arith.cmpi slt, %26, %29 : vector<1x128xi32>
    %c0_i32_6 = arith.constant 0 : i32
    %31 = arith.cmpi slt, %24, %c0_i32_6 : i32
    %32 = vector.broadcast %31 : i1 to vector<1x128xi1>
    %33 = vector.broadcast %32 : vector<1x128xi1> to vector<1x128xi1>
    %34 = arith.xori %30, %33 : vector<1x128xi1>
    %35 = arith.andi %34, %28 : vector<1x128xi1>
    %36 = vector.broadcast %24 : i32 to vector<1x128xi32>
    %37 = arith.addi %26, %36 : vector<1x128xi32>
    %38 = arith.select %35, %37, %26 : vector<1x128xi1>, vector<1x128xi32>
    %c0_i32_7 = arith.constant 0 : i32
    %39 = vector.broadcast %c0_i32_7 : i32 to vector<1x128xi32>
    %40 = arith.cmpi eq, %38, %39 : vector<1x128xi32>
    %cst = arith.constant -1.000000e+00 : f32
    %cst_8 = arith.constant 0.000000e+00 : f32
    %41 = vector.broadcast %cst : f32 to vector<1x128xf32>
    %42 = vector.broadcast %cst_8 : f32 to vector<1x128xf32>
    %43 = arith.select %40, %41, %42 : vector<1x128xi1>, vector<1x128xf32>
    %cst_9 = arith.constant 0.000000e+00 : f32
    %cst_10 = arith.constant 1.000000e+00 : f32
    %44 = vector.broadcast %cst_9 : f32 to vector<1x128xf32>
    %45 = vector.broadcast %cst_10 : f32 to vector<1x128xf32>
    %46 = arith.select %40, %44, %45 : vector<1x128xi1>, vector<1x128xf32>
    %47 = vector.broadcast %43 : vector<1x128xf32> to vector<16x128xf32>
    %48 = arith.mulf %21, %47 : vector<16x128xf32>
    %49 = vector.broadcast %46 : vector<1x128xf32> to vector<16x128xf32>
    %50 = arith.mulf %21, %49 : vector<16x128xf32>
    %c0_11 = arith.constant 0 : index
    %c0_12 = arith.constant 0 : index
    %c0_13 = arith.constant 0 : index
    %51 = vector.load %arg2[%c0_11, %c0_12, %c0_13] : memref<1x16x128xf32, #tpu.memory_space<vmem>>, vector<1x16x128xf32>
    %c127_i32 = arith.constant 127 : i32
    %52 = tpu.dynamic_rotate %51 by %c127_i32 dim 2 : vector<1x16x128xf32>, i32 -> vector<1x16x128xf32>
    %c1_i32_14 = arith.constant 1 : i32
    %53 = tpu.dynamic_rotate %51 by %c1_i32_14 dim 2 : vector<1x16x128xf32>, i32 -> vector<1x16x128xf32>
    %54 = vector.shape_cast %20 : vector<16x128xf32> to vector<1x16x128xf32>
    %55 = arith.mulf %51, %54 : vector<1x16x128xf32>
    %56 = vector.shape_cast %48 : vector<16x128xf32> to vector<1x16x128xf32>
    %57 = arith.mulf %52, %56 : vector<1x16x128xf32>
    %58 = arith.addf %55, %57 : vector<1x16x128xf32>
    %59 = vector.shape_cast %50 : vector<16x128xf32> to vector<1x16x128xf32>
    %60 = arith.mulf %53, %59 : vector<1x16x128xf32>
    %61 = arith.addf %58, %60 : vector<1x16x128xf32>
    %c0_15 = arith.constant 0 : index
    %c0_16 = arith.constant 0 : index
    %c0_17 = arith.constant 0 : index
    %62 = vector.load %arg6[%c0_15, %c0_16, %c0_17] : memref<1x16x128xf32, #tpu.memory_space<vmem>>, vector<1x16x128xf32>
    tpu.vector_store %arg6[%c0_15, %c0_16, %c0_17], %61 {strides = array<i32>} : memref<1x16x128xf32, #tpu.memory_space<vmem>>, vector<1x16x128xf32>,
    %c0_18 = arith.constant 0 : index
    %c0_19 = arith.constant 0 : index
    %c0_20 = arith.constant 0 : index
    %63 = vector.load %arg3[%c0_18, %c0_19, %c0_20] : memref<1x16x128xf32, #tpu.memory_space<vmem>>, vector<1x16x128xf32>
    %c127_i32_21 = arith.constant 127 : i32
    %64 = tpu.dynamic_rotate %63 by %c127_i32_21 dim 2 : vector<1x16x128xf32>, i32 -> vector<1x16x128xf32>
    %c1_i32_22 = arith.constant 1 : i32
    %65 = tpu.dynamic_rotate %63 by %c1_i32_22 dim 2 : vector<1x16x128xf32>, i32 -> vector<1x16x128xf32>
    %66 = vector.shape_cast %20 : vector<16x128xf32> to vector<1x16x128xf32>
    %67 = arith.mulf %63, %66 : vector<1x16x128xf32>
    %68 = vector.shape_cast %48 : vector<16x128xf32> to vector<1x16x128xf32>
    %69 = arith.mulf %64, %68 : vector<1x16x128xf32>
    %70 = arith.addf %67, %69 : vector<1x16x128xf32>
    %71 = vector.shape_cast %50 : vector<16x128xf32> to vector<1x16x128xf32>
    %72 = arith.mulf %65, %71 : vector<1x16x128xf32>
    %73 = arith.addf %70, %72 : vector<1x16x128xf32>
    %c0_23 = arith.constant 0 : index
    %c0_24 = arith.constant 0 : index
    %c0_25 = arith.constant 0 : index
    %74 = vector.load %arg7[%c0_23, %c0_24, %c0_25] : memref<1x16x128xf32, #tpu.memory_space<vmem>>, vector<1x16x128xf32>
    tpu.vector_store %arg7[%c0_23, %c0_24, %c0_25], %73 {strides = array<i32>} : memref<1x16x128xf32, #tpu.memory_space<vmem>>, vector<1x16x128xf32>,
    return
  }
  func.func @transform_0(%arg0: i32, %arg1: i32) -> (i32, i32, i32) {
    %c0_i32 = arith.constant 0 : i32
    %c0_i32_0 = arith.constant 0 : i32
    return %arg1, %arg0, %c0_i32 : i32, i32, i32
  }
  func.func @transform_1(%arg0: i32, %arg1: i32) -> (i32, i32, i32) {
    %c0_i32 = arith.constant 0 : i32
    %c0_i32_0 = arith.constant 0 : i32
    return %arg1, %arg0, %c0_i32 : i32, i32, i32
  }
  func.func @transform_2(%arg0: i32, %arg1: i32) -> (i32, i32, i32) {
    %c0_i32 = arith.constant 0 : i32
    %c0_i32_0 = arith.constant 0 : i32
    return %arg1, %arg0, %c0_i32 : i32, i32, i32
  }
  func.func @transform_3(%arg0: i32, %arg1: i32) -> (i32, i32) {
    %c0_i32 = arith.constant 0 : i32
    %c0_i32_0 = arith.constant 0 : i32
    %c0_i32_1 = arith.constant 0 : i32
    return %c0_i32, %c0_i32_0 : i32, i32
  }
  func.func @transform_4(%arg0: i32, %arg1: i32) -> (i32, i32, i32) {
    %c0_i32 = arith.constant 0 : i32
    %c0_i32_0 = arith.constant 0 : i32
    return %arg1, %arg0, %c0_i32 : i32, i32, i32
  }
  func.func @transform_5(%arg0: i32, %arg1: i32) -> (i32, i32, i32) {
    %c0_i32 = arith.constant 0 : i32
    %c0_i32_0 = arith.constant 0 : i32
    return %arg1, %arg0, %c0_i32 : i32, i32, i32
  }
}

</mosaic_0001>

<bundles_post_ra>
// kernel: tpu_custom_call.1
= control target key start
LH: loop header
LB: loop body
LE: loop exit
PB: predicated region body
PF: predicated region fallthrough
CT: control target
= control target key end

     0   :  { %11 = vsyncpa [#allocation3], 0  ;;  %s1987_s0 = inlined_call_operand.vmem [shape: f32[2,16,128], index: 0, kind: input, shape index: {}]   ;;  %s1988_s1 = inlined_call_operand.hbm [shape: f32[2,16,128], index: 1, kind: input, shape index: {}]   ;;  %s1989_s2 = inlined_call_operand.vmem [shape: f32[2,16,3], index: 2, kind: input, shape index: {}]   ;;  %s1990_s3 = inlined_call_operand.vmem [shape: f32[3,128], index: 3, kind: input, shape index: {}]   ;;  %s1991_s4 = inlined_call_operand.hbm [shape: f32[2,16,128], index: 4, kind: output, shape index: {0}]   ;;  %s1992_s5 = inlined_call_operand.hbm [shape: f32[2,16,128], index: 5, kind: output, shape index: {1}]  }
   0x1   :  { %13 = vsyncpa [#allocation3 + $0x1], 0 }
   0x2   :  { %14 = vsyncpa [#allocation4], 0 }
   0x3   :  { %16 = vsyncpa [#allocation4 + $0x1], 0 }
   0x4   :  { %17 = vsyncpa [#allocation7], 0 }
   0x5   :  { %19 = vsyncpa [#allocation7 + $0x1], 0  ;;  %s1598_s18 = smov 0   ;;  %s1600_s19 = smov 0  }
   0x6   :  { %s1602_s20 = smov 0   ;;  %s1604_s21 = smov 0  }
   0x7   :  { %s1606_s22 = smov 0   ;;  %s1608_s23 = smov 0  }
   0x8 LB: > { %s1277_s24 = sadd.s32 4294967295, %s1549_s23   ;;  %s1278_s25 = sadd.s32 4294967294, %s1549_s23   ;;  %s1549_s23 = sphi %s1608_s23, %s25_s23   ;;  %s1545_s22 = sphi %s1606_s22, %s2007_s22   ;;  %s1541_s21 = sphi %s1604_s21, %s2006_s21   ;;  %s1537_s20 = sphi %s1602_s20, %s2005_s20   ;;  %s1533_s19 = sphi %s1600_s19, %s2004_s19   ;;  %s1529_s18 = sphi %s1598_s18, %s2003_s18  }
   0x9   : > { %s34_s26 = sadd.s32 1, %s1545_s22  ;;  %s74_s27 = sadd.s32 1, %s1537_s20 }
   0xa   : > { %p35_p0 = scmp.ge.s32.totalorder %s34_s26, 2  ;;  %p81_p1 = scmp.ne.s32.totalorder %s1537_s20, %s1533_s19 }
   0xb   : > { %p82_p2 = scmp.eq.s32.totalorder %s1549_s23, 0  ;;  %p87_p3 = scmp.ne.s32.totalorder %s1533_s19, %s1529_s18 }
   0xc   : > { %s2009_s26 = smov (%p35_p0, %s34_s26), 0  ;;  %p88_p5 = scmp.eq.s32.totalorder %s1277_s24, 0 }
   0xd   : > { %p1639_p4 = por %p82_p2, %p81_p1  ;;  %s69_s29 = ssub.s32 %s1545_s22, %s2009_s26 }
   0xe   : > { %p162_p6 = scmp.eq.s32.totalorder %s1277_s24, 1  ;;  %p72_p7 = scmp.eq.s32.totalorder %s69_s29, 0 }
   0xf   : > { %p1645_p8 = por %p88_p5, %p87_p3  ;;  %p168_p10 = scmp.eq.s32.totalorder %s1278_s25, 1 }
  0x10   : > { %p1649_p9 = por %p162_p6, %p81_p1  ;;  %p1280_p12 = scmp.ge.s32.totalorder %s1549_s23, 2 }
  0x11   : > { %s1654_s7 = scalar_select %p72_p7, %s1537_s20, %s74_s27  }
  0x12   : > { %p1656_p11 = por %p168_p10, %p87_p3  ;;  %p1334_p13 = scmp.lt.s32.totalorder %s1549_s23, 2 }
  0x13   : > { %s232_s9 = sand.u32 1, %s1537_s20   ;;  %s1312_s11 = sshll.u32 %s1545_s22, 4 }
  0x14   : > { %s1281_s10 = sshll.u32 %s232_s9, 4  ;;  %s243_s14 = scalar_lea.hbm %s1988_s1, %s1312_s11 }
  0x15   : > { %s236_s15 = scalar_lea.vmem [#allocation2], %s1281_s10  ;;  %s244_s17 = sshll.u32 %s243_s14, 4  ;;  %s245_s17 = int_to_ptr.hbm [resolvable:$true] %s244_s17 }
  0x16   : > { %s246_s16 = sshll.u32 %s236_s15, 4  ;;  %p1324_p0 = pnand %p1334_p13, %p1639_p4  ;;  %s247_s16 = int_to_ptr.vmem [resolvable:$true] %s246_s16 }
  0x17   : > { %p1284_p1 = scmp.ge.s32.totalorder %s1549_s23, 1  ;;  %s233_s24 = scalar_lea.sflag [#allocation3], %s232_s9 }
  0x18   : > { %s1551_s25 = smov 128   ;;  %s1552_s27 = smov 8  }
  0x19   : > { %1326 = dma.hbm_to_vmem [thread:$0]  (!%p1324_p0), %s245_s17, 256, %s247_s16, %s233_s24, %s1551_s25, %s1551_s25, %s1552_s27  }
  0x1a   : > { %p267_p2 = scmp.lt.s32.totalorder %s1549_s23, 3 }
  0x1c   : > { %p268_p3 = pnand %p1284_p1, %p267_p2 }
  0x1d   : > { %s1672_s29 = sand.u32 (!%p268_p3), 1, %s1533_s19  }
  0x1e   : > { %271 = sbr.rel (%p268_p3) target bundleno = 306 (0x132), region = 36  ;;  %s1675_s10 = sshll.u32 (!%p268_p3), %s1672_s29, 4 }
  0x1f   : > { %s274_s11 = scalar_lea.sflag (!%p268_p3), [#allocation3], %s1672_s29  ;;  %s277_s28 = scalar_lea.vmem (!%p268_p3), [#allocation2], %s1675_s10 }
  0x23   : > { %1516 = dma.done.wait (%p1645_p8), %s274_s11, 256  }
  0x24   : > { %1518 = vsyncadd (%p1645_p8), %s274_s11, 4294967040  ;;  %p329_p4 = scmp.lt.s32.totalorder %s1541_s21, 1  ;;  %v1553_v0 = vmov 1   ;;  %v1554_v1 = vmov 0   ;;  %v1555_v2 = vmov 2   ;;  %s1556_s24 = smov 127  }
  0x25   : > { %1402 = vset.pattern.permute.xlu1 %v1553_v0  ;;  %1401 = vset.pattern.permute.xlu0 %v1554_v1  ;;  %v1698_v7 = vld [vmem:[%s277_s28] sm:$0xff]  ;;  %v1701_v8 = vld [vmem:[%s277_s28 + $0x8] sm:$0xff]  ;;  %s1557_s25 = smov 1   ;;  %v1558_v45 = vmov 2102212464   ;;  %s1908_s28 = scalar_lea.vmem [#allocation5], %s1675_s10 }
  0x26   : > { %s330_s9 = scalar_select %p329_p4, %s1541_s21, 1  ;;  %1403 = vset.pattern.permute.xlu2 %v1555_v2  ;;  %v351_v9 = vld [vmem:[%s1990_s3] sm:$0x7]  ;;  %v1559_v47 = vmov 920167782  }
  0x27   : > { %v388_v11 = vperm.slane %v351_v9, 2  ;;  %v375_v12 = vperm.slane %v351_v9, 1  ;;  %v364_v13 = vperm.slane %v351_v9, 0  ;;  %v1560_v50 = vmov 683565275   ;;  %s1077_s27 = scalar_lea.sflag [#allocation4], %s1672_s29 }
  0x28   : > { %s1313_s12 = sshll.u32 %s330_s9, 4  ;;  %v1561_v53 = vmov 1326507024   ;;  %v1562_v55 = vmov 2475754826   ;;  %s1912_s9 = scalar_lea.vmem [#allocation6], %s1675_s10 }
  0x29   : > { %s347_s15 = scalar_lea.vmem %s1989_s2, %s1313_s12  ;;  %s336_s17 = scalar_lea.vmem %s1987_s0, %s1313_s12  ;;  %v1563_v59 = vmov 2131351028  }
  0x2a   : > { %v352_v3 = vld [vmem:[%s347_s15] sm:$0xff]  ;;  %v353_v4 = vld [vmem:[%s347_s15 + $0x8] sm:$0xff]  ;;  %s1315_s10 = sshll.u32 %s1541_s21, 4  ;;  %s1096_s12 = sshll.u32 %s1908_s28, 4  ;;  %s1930_s12 = int_to_ptr.vmem [resolvable:$true] %s1096_s12 }
  0x2b   : > { %368 = vperm.xlu1 %1402, %v352_v3   ;;  %356 = vperm.xlu0 %1401, %v352_v3   ;;  %v1692_v5 = vld [vmem:[%s336_s17] sm:$0xff]  ;;  %v1694_v6 = vld [vmem:[%s336_s17 + $0x8] sm:$0xff]  ;;  %s1095_s15 = scalar_lea.hbm %s1991_s4, %s1315_s10  ;;  %s1115_s21 = sshll.u32 %s1912_s9, 4  ;;  %s1932_s21 = int_to_ptr.vmem [resolvable:$true] %s1115_s21 }
  0x2c   : > { %381 = vperm.xlu2 %1403, %v352_v3   ;;  %s1114_s17 = scalar_lea.hbm %s1992_s5, %s1315_s10 }
  0x33   : > { %372 = vperm.xlu1 %1402, %v353_v4   ;;  %361 = vperm.xlu0 %1401, %v353_v4  }
  0x34   : > { %385 = vperm.xlu2 %1403, %v353_v4  }
  0x3b   : > { %1034 = vrot.lane.b32.xlu0 %v1692_v5, %s1556_s24  ;;  %1036 = vrot.lane.b32.xlu1 %v1694_v6, %s1556_s24 }
  0x3c   : > { %1056 = vrot.lane.b32.xlu2 %v1698_v7, %s1556_s24  ;;  %1404 = vset.pattern.permute.xlu0 %v1555_v2 }
  0x43   : > { %1058 = vrot.lane.b32.xlu0 %v1701_v8, %s1556_s24  ;;  %1038 = vrot.lane.b32.xlu1 %v1692_v5, %s1557_s25  ;;  %s1098_s24 = sshll.u32 %s1095_s15, 4  ;;  %s1455_s15 = scalar_lea.hbm %s1991_s4, 32  ;;  %s1099_s24 = int_to_ptr.hbm [resolvable:$true] %s1098_s24 }
  0x44   : > { %1040 = vrot.lane.b32.xlu2 %v1694_v6, %s1557_s25  ;;  %s1449_s11 = sshra.s32 %s1099_s24, 4  ;;  %s1450_s11 = int_to_ptr.hbm [resolvable:$true] %s1449_s11 }
  0x45   : > { %s1451_s10 = scalar_lea.hbm %s1450_s11, 16  ;;  %p1456_p8 = scmp.lt.s32.totalorder %s1450_s11, %s1991_s4 }
  0x46   : > { %p1452_p5 = scmp.ne.s32.totalorder %s1450_s11, %s1451_s10  ;;  %p1457_p10 = scmp.lt.s32.totalorder %s1455_s15, %s1451_s10 }
  0x48   : > { %p1453_p6 = pnand %p1452_p5, %p1649_p9  ;;  %p1458_p13 = por %p1457_p10, %p1456_p8 }
  0x4a   : > { %p1454_p7 = pneg %p1453_p6 }
  0x4b   : > { %1060 = vrot.lane.b32.xlu0 %v1698_v7, %s1557_s25  ;;  %1062 = vrot.lane.b32.xlu1 %v1701_v8, %s1557_s25  ;;  %s1117_s25 = sshll.u32 %s1114_s17, 4  ;;  %s1935_s25 = int_to_ptr.hbm [resolvable:$true] %s1117_s25 }
  0x4c   : > { %p1459_p0 = pnand %p1458_p13, %p1454_p7 }
  0x86   : > { %v382_v10 = vpop.permute.xlu2 %381 }
  0x87   : > { %v389_v16 = vmul.f32 %v388_v11, %v382_v10 }
  0x8e   : > { %v386_v22 = vpop.permute.xlu2 %385 }
  0x8f   : > { %v390_v31 = vmul.f32 %v388_v11, %v386_v22 }
  0x9d   : > { %v369_v14 = vpop.permute.xlu1 %368  ;;  %v357_v15 = vpop.permute.xlu0 %356 }
  0x9e   : > { %v376_v17 = vmul.f32 %v375_v12, %v369_v14  ;;  %v365_v18 = vmul.f32 %v364_v13, %v357_v15 }
  0xa0   : > { %v378_v19 = vadd.f32 %v376_v17, %v365_v18 }
  0xa2   : > { %v1711_v20 = vadd.f32 %v389_v16, %v378_v19 }
  0xa4   : > { %v396_v21 = vand.u32 2139095040, %v1711_v20  ;;  %v393_v23 = vand.u32 2147483647, %v1711_v20 }
  0xa5   : > { %v373_v24 = vpop.permute.xlu1 %372  ;;  %v362_v25 = vpop.permute.xlu0 %361 }
  0xa6   : > { %v397_v26 = vshrl.u32 %v396_v21, 23  ;;  %v377_v27 = vmul.f32 %v375_v12, %v373_v24  ;;  %v366_v28 = vmul.f32 %v364_v13, %v362_v25  ;;  %v400_v29 = vand.u32 8388607, %v393_v23 }
  0xa8   : > { %v1292_v30 = vadd.s32 4294967169, %v397_v26  ;;  %v379_v32 = vadd.f32 %v377_v27, %v366_v28  ;;  %v401_v33 = vor.u32 8388608, %v400_v29 }
  0xaa   : > { %v403_v34 = vadd.s32 1, %v1292_v30  ;;  %v1717_v35 = vadd.f32 %v390_v31, %v379_v32  ;;  %v1720_v37 = vshll.u32 %v401_v33, 8 }
  0xac   : > { %vm404_vm0 = vcmp.gt.s32.totalorder %v403_v34, 0  ;;  %v550_v36 = vand.u32 2139095040, %v1717_v35  ;;  %v1725_v43 = vand.u32 65535, %v1720_v37  ;;  %v547_v44 = vand.u32 2147483647, %v1717_v35 }
  0xad   : > { %v405_v38 = vsel %vm404_vm0, %v403_v34, 0  ;;  %v443_v33 = vshrl.u32 %v1720_v37, 16 }
  0xae   : > { %v407_v39 = vand.u32 31, %v405_v38  ;;  %v551_v40 = vshrl.u32 %v550_v36, 23  ;;  %v1722_v41 = vshrl.u32 %v405_v38, 5  ;;  %v1743_v19 = vand.u32 8388607, %v547_v44 }
  0xb0   : > { %v408_v42 = vsub.s32 32, %v407_v39  ;;  %v419_v46 = vshll.u32 %v1558_v45, %v407_v39  ;;  %v422_v48 = vshll.u32 %v1559_v47, %v407_v39  ;;  %v1295_v49 = vadd.s32 4294967169, %v551_v40 }
  0xb1   : > { %v410_v51 = vshll.u32 %v1560_v50, %v407_v39  ;;  %v413_v57 = vshll.u32 %v1562_v55, %v407_v39  ;;  %v416_v61 = vshll.u32 %v1563_v59, %v407_v39  ;;  %vm428_vm1 = vcmp.lt.s32.totalorder %v1722_v41, 4 }
  0xb2   : > { %v420_v52 = vshrl.u32 %v1559_v47, %v408_v42  ;;  %v423_v54 = vshrl.u32 %v1561_v53, %v408_v42  ;;  %v411_v56 = vshrl.u32 %v1562_v55, %v408_v42  ;;  %v557_v58 = vadd.s32 1, %v1295_v49 }
  0xb3   : > { %v414_v60 = vshrl.u32 %v1563_v59, %v408_v42  ;;  %v417_v62 = vshrl.u32 %v1558_v45, %v408_v42  ;;  %v409_v3 = vshrl.u32 %v1560_v50, %v408_v42  ;;  %vm425_vm3 = vcmp.lt.s32.totalorder %v1722_v41, 1 }
  0xb4   : > { %v421_v63 = vor.u32 %v420_v52, %v419_v46  ;;  %v424_v0 = vor.u32 %v423_v54, %v422_v48  ;;  %v412_v2 = vor.u32 %v411_v56, %v410_v51  ;;  %vm558_vm2 = vcmp.gt.s32.totalorder %v557_v58, 0 }
  0xb5   : > { %v415_v4 = vor.u32 %v414_v60, %v413_v57  ;;  %v418_v9 = vor.u32 %v417_v62, %v416_v61  ;;  %v559_v12 = vsel %vm558_vm2, %v557_v58, 0  ;;  %vm427_vm4 = vcmp.lt.s32.totalorder %v1722_v41, 3 }
  0xb6   : > { %v434_v10 = vsel %vm428_vm1, %v421_v63, 920167782  ;;  %v438_v11 = vsel %vm428_vm1, %v424_v0, 1326507024  ;;  %v1738_v13 = vand.u32 31, %v559_v12  ;;  %v1745_v21 = vshrl.u32 %v559_v12, 5 }
  0xb7   : > { %v430_v14 = vsel %vm428_vm1, %v418_v9, 2102212464  ;;  %v433_v15 = vsel %vm425_vm3, %v412_v2, %v415_v4  ;;  %v435_v16 = vsel %vm427_vm4, %v418_v9, %v434_v10  ;;  %v437_v17 = vsel %vm425_vm3, %v415_v4, %v418_v9 }
  0xb8   : > { %v439_v18 = vsel %vm427_vm4, %v421_v63, %v438_v11  ;;  %v1748_v22 = vsub.s32 32, %v1738_v13  ;;  %vm426_vm5 = vcmp.lt.s32.totalorder %v1722_v41, 2  ;;  %v429_v24 = vsel %vm425_vm3, %v409_v3, %v412_v2 }
  0xb9   : > { %v576_v25 = vshll.u32 %v1559_v47, %v1738_v13  ;;  %v431_v26 = vsel %vm427_vm4, %v415_v4, %v430_v14  ;;  %v436_v27 = vsel %vm426_vm5, %v433_v15, %v435_v16  ;;  %v440_v28 = vsel %vm426_vm5, %v437_v17, %v439_v18 }
  0xba   : > { %v574_v29 = vshrl.u32 %v1559_v47, %v1748_v22  ;;  %v577_v30 = vshrl.u32 %v1561_v53, %v1748_v22  ;;  %v444_v31 = vand.u32 65535, %v440_v28  ;;  %v445_v32 = vshrl.u32 %v440_v28, 16 }
  0xbb   : > { %v466_v34 = vand.u32 65535, %v436_v27  ;;  %v467_v36 = vshrl.u32 %v436_v27, 16  ;;  %v573_v38 = vshll.u32 %v1558_v45, %v1738_v13  ;;  %vm582_vm6 = vcmp.lt.s32.totalorder %v1745_v21, 4 }
  0xbc   : > { %v578_v39 = vor.u32 %v577_v30, %v576_v25  ;;  %v447_v40 = vmul.u32 %v445_v32, %v1725_v43  ;;  %v1765_v42 = vsel %vm426_vm5, %v429_v24, %v431_v26  ;;  %v448_v46 = vmul.u32 %v444_v31, %v443_v33 }
  0xbd   : > { %v469_v47 = vmul.u32 %v467_v36, %v1725_v43  ;;  %v555_v48 = vor.u32 8388608, %v1743_v19  ;;  %v575_v49 = vor.u32 %v574_v29, %v573_v38  ;;  %v446_v51 = vmul.u32 %v444_v31, %v1725_v43 }
  0xbe   : > { %v449_v52 = vmul.u32 %v445_v32, %v443_v33  ;;  %v450_v53 = vshll.u32 %v447_v40, 16  ;;  %v592_v54 = vsel %vm582_vm6, %v578_v39, 1326507024  ;;  %v451_v56 = vshrl.u32 %v447_v40, 16 }
  0xbf   : > { %v468_v57 = vmul.u32 %v466_v34, %v1725_v43  ;;  %v470_v58 = vmul.u32 %v466_v34, %v443_v33  ;;  %v452_v41 = vshll.u32 %v448_v46, 16  ;;  %v472_v61 = vshll.u32 %v469_v47, 16 }
  0xc0   : > { %vm454_vm7 = vc.u32 %v446_v51, %v450_v53  ;;  %v456_v60 = vadd.s32 %v450_v53, %v446_v51  ;;  %v453_v62 = vshrl.u32 %v448_v46, 16  ;;  %v471_v0 = vmul.u32 %v467_v36, %v443_v33 }
  0xc1   : > { %v455_v63 = vsel %vm454_vm7, 1, %v1554_v1  ;;  %v474_v2 = vshll.u32 %v470_v58, 16  ;;  %vm476_vm9 = vc.u32 %v468_v57, %v472_v61  ;;  %v478_v4 = vadd.s32 %v472_v61, %v468_v57 }
  0xc2   : > { %v457_v3 = vadd.s32 %v455_v63, %v449_v52  ;;  %vm458_vm8 = vc.u32 %v456_v60, %v452_v41  ;;  %v477_v10 = vsel %vm476_vm9, 1, %v1554_v1  ;;  %v564_v43 = vshll.u32 %v1560_v50, %v1738_v13 }
  0xc3   : > { %v459_v9 = vsel %vm458_vm8, 1, %v1554_v1  ;;  %v565_v11 = vshrl.u32 %v1562_v55, %v1748_v22  ;;  %v473_v14 = vshrl.u32 %v469_v47, 16  ;;  %v479_v15 = vadd.s32 %v477_v10, %v471_v0 }
  0xc4   : > { %v461_v12 = vadd.s32 %v459_v9, %v457_v3  ;;  %vm480_vm10 = vc.u32 %v478_v4, %v474_v2  ;;  %v567_v18 = vshll.u32 %v1562_v55, %v1738_v13  ;;  %v568_v19 = vshrl.u32 %v1563_v59, %v1748_v22 }
  0xc5   : > { %v481_v16 = vsel %vm480_vm10, 1, %v1554_v1  ;;  %v1781_v17 = vor.u32 %v565_v11, %v564_v43  ;;  %v570_v26 = vshll.u32 %v1563_v59, %v1738_v13  ;;  %v571_v27 = vshrl.u32 %v1558_v45, %v1748_v22 }
  0xc6   : > { %v462_v24 = vadd.s32 %v461_v12, %v451_v56  ;;  %v483_v25 = vadd.s32 %v481_v16, %v479_v15  ;;  %v588_v28 = vsel %vm582_vm6, %v575_v49, 920167782  ;;  %v475_v29 = vshrl.u32 %v470_v58, 16 }
  0xc7   : > { %v1793_v30 = vor.u32 %v568_v19, %v567_v18  ;;  %vm579_vm11 = vcmp.lt.s32.totalorder %v1745_v21, 1  ;;  %v572_v32 = vor.u32 %v571_v27, %v570_v26  ;;  %vm581_vm12 = vcmp.lt.s32.totalorder %v1745_v21, 3 }
  0xc8   : > { %v1796_v55 = vadd.s32 %v462_v24, %v453_v62  ;;  %v484_v31 = vadd.s32 %v483_v25, %v473_v14  ;;  %v1799_v33 = vadd.s32 %v478_v4, %v474_v2  ;;  %v593_v59 = vsel %vm581_vm12, %v575_v49, %v592_v54 }
  0xc9   : > { %v587_v45 = vsel %vm579_vm11, %v1781_v17, %v1793_v30  ;;  %v1807_v13 = vshll.u32 %v555_v48, 8  ;;  %v486_v36 = vmul.u32 %v1720_v37, %v1765_v42  ;;  %vm580_vm14 = vcmp.lt.s32.totalorder %v1745_v21, 2 }
  0xca   : > { %v485_v34 = vadd.s32 %v484_v31, %v475_v29  ;;  %vm488_vm13 = vc.u32 %v1796_v55, %v1799_v33  ;;  %v589_v38 = vsel %vm581_vm12, %v572_v32, %v588_v28  ;;  %v591_v39 = vsel %vm579_vm11, %v1793_v30, %v572_v32 }
  0xcb   : > { %v590_v46 = vsel %vm580_vm14, %v587_v45, %v589_v38  ;;  %v594_v47 = vsel %vm580_vm14, %v591_v39, %v593_v59  ;;  %v596_v37 = vand.u32 65535, %v1807_v13  ;;  %v597_v42 = vshrl.u32 %v1807_v13, 16 }
  0xcc   : > { %v489_v40 = vadd.s32 1, %v485_v34  ;;  %v598_v48 = vand.u32 65535, %v594_v47  ;;  %v599_v49 = vshrl.u32 %v594_v47, 16  ;;  %v620_v51 = vand.u32 65535, %v590_v46 }
  0xcd   : > { %v621_v53 = vshrl.u32 %v590_v46, 16  ;;  %v563_v29 = vshrl.u32 %v1560_v50, %v1748_v22  ;;  %v584_v31 = vsel %vm582_vm6, %v572_v32, 2102212464  ;;  %vm395_vm7 = vcmp.lt.s32.totalorder %v1711_v20, 0 }
  0xce   : > { %v490_v52 = vsel %vm488_vm13, %v489_v40, %v485_v34  ;;  %v601_v56 = vmul.u32 %v599_v49, %v596_v37  ;;  %v602_v57 = vmul.u32 %v598_v48, %v597_v42  ;;  %v624_v41 = vmul.u32 %v620_v51, %v597_v42 }
  0xcf   : > { %v491_v54 = vadd.s32 %v490_v52, %v486_v36  ;;  %v623_v58 = vmul.u32 %v621_v53, %v596_v37  ;;  %v600_v61 = vmul.u32 %v598_v48, %v596_v37  ;;  %v603_v63 = vmul.u32 %v599_v49, %v597_v42 }
  0xd0   : > { %v604_v62 = vshll.u32 %v601_v56, 16  ;;  %v622_v0 = vmul.u32 %v620_v51, %v596_v37  ;;  %v606_v4 = vshll.u32 %v602_v57, 16  ;;  %v628_v43 = vshll.u32 %v624_v41, 16 }
  0xd1   : > { %v492_v60 = vadd.s32 536870912, %v491_v54  ;;  %v626_v2 = vshll.u32 %v623_v58, 16  ;;  %v625_v15 = vmul.u32 %v621_v53, %v597_v42  ;;  %v605_v26 = vshrl.u32 %v601_v56, 16 }
  0xd2   : > { %vm608_vm15 = vc.u32 %v600_v61, %v604_v62  ;;  %v610_v9 = vadd.s32 %v604_v62, %v600_v61  ;;  %v607_v45 = vshrl.u32 %v602_v57, 16  ;;  %v627_v34 = vshrl.u32 %v623_v58, 16 }
  0xd3   : > { %v1825_v3 = vshrl.u32 %v492_v60, 30  ;;  %v609_v10 = vsel %vm608_vm15, 1, %v1554_v1  ;;  %vm630_vm0 = vc.u32 %v622_v0, %v626_v2  ;;  %v632_v11 = vadd.s32 %v626_v2, %v622_v0 }
  0xd4   : > { %v611_v14 = vadd.s32 %v609_v10, %v603_v63  ;;  %vm612_vm1 = vc.u32 %v610_v9, %v606_v4  ;;  %v631_v18 = vsel %vm630_vm0, 1, %v1554_v1  ;;  %v583_v39 = vsel %vm579_vm11, %v563_v29, %v1781_v17 }
  0xd5   : > { %v494_v12 = vshll.u32 %v1825_v3, 30  ;;  %v613_v16 = vsel %vm612_vm1, 1, %v1554_v1  ;;  %vm634_vm2 = vc.u32 %v632_v11, %v628_v43  ;;  %v633_v25 = vadd.s32 %v631_v18, %v625_v15  ;;  %v1861_v18 = vpop.permute.xlu0 %1034 }
  0xd6   : > { %v615_v24 = vadd.s32 %v613_v16, %v611_v14  ;;  %v635_v27 = vsel %vm634_vm2, 1, %v1554_v1  ;;  %v585_v1 = vsel %vm581_vm12, %v1793_v30, %v584_v31  ;;  %v629_v50 = vshrl.u32 %v624_v41, 16 }
  0xd7   : > { %v495_v19 = vsub.s32 %v491_v54, %v494_v12  ;;  %v637_v36 = vadd.s32 %v635_v27, %v633_v25  ;;  %v636_v37 = vadd.s32 %v632_v11, %v628_v43  ;;  %v586_v32 = vsel %vm580_vm14, %v583_v39, %v585_v1 }
  0xd8   : > { %v616_v59 = vadd.s32 %v615_v24, %v605_v26  ;;  %v487_v17 = vadd.s32 %v1799_v33, %v1796_v55  ;;  %v640_v30 = vmul.u32 %v1807_v13, %v586_v32  ;;  %vm1853_vm8 = vcmp.le.f32.partialorder %v393_v23, 0.7853982 }
  0xd9   : > { %vm496_vm3 = vcmp.lt.s32.totalorder %v495_v19, 0  ;;  %v497_v28 = vsub.s32 0, %v495_v19  ;;  %v638_v47 = vadd.s32 %v637_v36, %v627_v34  ;;  %v517_v43 = vsub.s32 4, %v1825_v3 }
  0xda   : > { %v617_v46 = vadd.s32 %v616_v59, %v607_v45  ;;  %v1011_v12 = vlaneseq  ;;  %vm536_vm11 = vweird.f32 %v1711_v20  ;;  %vm549_vm12 = vcmp.lt.s32.totalorder %v1717_v35, 0 }
  0xdb   : > { %v498_v38 = vsel %vm496_vm3, %v497_v28, %v495_v19  ;;  %v639_v42 = vadd.s32 %v638_v47, %v629_v50  ;;  %v518_v24 = vsel %vm395_vm7, %v517_v43, %v1825_v3  ;;  %vm1882_vm15 = vcmp.le.f32.partialorder %v547_v44, 0.7853982 }
  0xdc   : > { %v499_v40 = vclz %v498_v38  ;;  %vm642_vm5 = vc.u32 %v617_v46, %v636_v37  ;;  %v1012_v26 = vand.u32 127, %v1011_v12  ;;  %v520_v31 = vsel %vm1853_vm8, 0, %v518_v24 }
  0xdd   : > { %v643_v49 = vadd.s32 1, %v639_v42  ;;  %v641_v45 = vadd.s32 %v636_v37, %v617_v46  ;;  %v537_v46 = vand.u32 3, %v520_v31  ;;  %v1870_v37 = vpop.permute.xlu1 %1036 }
  0xde   : > { %v1293_v22 = vadd.s32 4294967294, %v499_v40  ;;  %v1017_v39 = vand.u32 1, %v1012_v26 }
  0xdf   : > { %v644_v53 = vsel %vm642_vm5, %v643_v49, %v639_v42  ;;  %vm538_vm13 = vcmp.lt.s32.totalorder %v537_v46, 2  ;;  %vm539_vm14 = vcmp.eq.s32.totalorder %v537_v46, 0  ;;  %vm542_vm0 = vcmp.eq.s32.totalorder %v537_v46, 2 }
  0xe0   : > { %vm1294_vm4 = vcmp.lt.s32.totalorder %v1293_v22, 0  ;;  %v645_v58 = vadd.s32 %v644_v53, %v640_v30  ;;  %vm1866_vm10 = vcmp.eq.s32.totalorder %v1017_v39, 0 }
  0xe1   : > { %v502_v48 = vsel %vm1294_vm4, 0, %v1293_v22  ;;  %v845_v22 = vadd.s32 3, %v520_v31 }
  0xe2   : > { %v503_v51 = vsub.s32 32, %v502_v48  ;;  %v507_v52 = vsub.s32 4294967266, %v502_v48  ;;  %v504_v54 = vshll.u32 %v495_v19, %v502_v48  ;;  %v646_v60 = vadd.s32 536870912, %v645_v58 }
  0xe4   : > { %v505_v56 = vshrl.u32 %v487_v17, %v503_v51  ;;  %v508_v57 = vadd.s32 127, %v507_v52  ;;  %v1847_v62 = vshrl.u32 %v646_v60, 30  ;;  %v1872_v52 = vpop.permute.xlu0 %1058 }
  0xe6   : > { %v506_v41 = vor.u32 %v505_v56, %v504_v54  ;;  %v509_v21 = vshll.u32 %v508_v57, 23  ;;  %v648_v2 = vshll.u32 %v1847_v62, 30  ;;  %v846_v54 = vand.u32 3, %v845_v22 }
  0xe8   : > { %v510_v61 = vor.u32 4788187, %v509_v21  ;;  %v513_v0 = vcvt.s32.f32 %v506_v41  ;;  %v649_v33 = vsub.s32 %v645_v58, %v648_v2  ;;  %v1564_v58 = vmov 0.0  }
  0xe9   : > { %v1877_v41 = vsel %vm1866_vm10, -1.0, %v1564_v58  ;;  %vm847_vm1 = vcmp.lt.s32.totalorder %v846_v54, 2  ;;  %vm848_vm2 = vcmp.eq.s32.totalorder %v846_v54, 0  ;;  %vm851_vm3 = vcmp.eq.s32.totalorder %v846_v54, 2 }
  0xea   : > { %v511_v63 = vand.u32 2147483647, %v510_v61  ;;  %vm650_vm6 = vcmp.lt.s32.totalorder %v649_v33, 0  ;;  %v651_v13 = vsub.s32 0, %v649_v33 }
  0xec   : > { %v514_v55 = vmul.f32 %v513_v0, %v511_v63  ;;  %v652_v11 = vsel %vm650_vm6, %v651_v13, %v649_v33  ;;  %v1061_v26 = vpop.permute.xlu0 %1060 }
  0xed   : > { %v653_v15 = vclz %v652_v11  ;;  %v1565_v11 = vmov 1.0  }
  0xee   : > { %v515_v4 = vxor.u32 2147483648, %v514_v55  ;;  %v1027_v12 = vsel %vm1866_vm10, 0.0, %v1565_v11  ;;  %vm690_vm10 = vweird.f32 %v1717_v35 }
  0xef   : > { %v1296_v19 = vadd.s32 4294967294, %v653_v15 }
  0xf0   : > { %v516_v10 = vsel %vm395_vm7, %v515_v4, %v514_v55  ;;  %v671_v55 = vsub.s32 4, %v1847_v62 }
  0xf1   : > { %v519_v14 = vsel %vm1853_vm8, %v1711_v20, %v516_v10  ;;  %vm1297_vm9 = vcmp.lt.s32.totalorder %v1296_v19, 0 }
  0xf2   : > { %v521_v16 = vmul.f32 %v519_v14, %v519_v14  ;;  %v656_v29 = vsel %vm1297_vm9, 0, %v1296_v19  ;;  %v1057_v19 = vpop.permute.xlu2 %1056 }
  0xf3   : > { %v657_v59 = vsub.s32 32, %v656_v29  ;;  %v661_v34 = vsub.s32 4294967266, %v656_v29  ;;  %v658_v40 = vshll.u32 %v649_v33, %v656_v29 }
  0xf4   : > { %v522_v23 = vmul.f32 -0.001358992, %v521_v16  ;;  %v529_v25 = vmul.f32 -0.00019511016, %v521_v16 }
  0xf5   : > { %v659_v1 = vshrl.u32 %v641_v45, %v657_v59  ;;  %v662_v47 = vadd.s32 127, %v661_v34 }
  0xf6   : > { %v523_v27 = vadd.f32 0.041655596, %v522_v23  ;;  %v530_v28 = vadd.f32 0.008332121, %v529_v25  ;;  %v1039_v25 = vpop.permute.xlu1 %1038 }
  0xf7   : > { %v660_v32 = vor.u32 %v659_v1, %v658_v40  ;;  %v663_v42 = vshll.u32 %v662_v47, 23 }
  0xf8   : > { %v524_v36 = vmul.f32 %v523_v27, %v521_v16  ;;  %v531_v38 = vmul.f32 %v530_v28, %v521_v16  ;;  %v672_v28 = vsel %vm549_vm12, %v671_v55, %v1847_v62 }
  0xf9   : > { %v664_v51 = vor.u32 4788187, %v663_v42  ;;  %v667_v57 = vcvt.s32.f32 %v660_v32  ;;  %v674_v47 = vsel %vm1882_vm15, 0, %v672_v28 }
  0xfa   : > { %v525_v3 = vadd.f32 -0.4999988, %v524_v36  ;;  %v532_v50 = vadd.f32 -0.16666654, %v531_v38  ;;  %v1000_v32 = vadd.s32 3, %v674_v47  ;;  %v691_v46 = vand.u32 3, %v674_v47 }
  0xfb   : > { %v665_v56 = vand.u32 2147483647, %v664_v51 }
  0xfc   : > { %v526_v48 = vmul.f32 %v525_v3, %v521_v16  ;;  %v533_v49 = vmul.f32 %v532_v50, %v521_v16  ;;  %v1001_v51 = vand.u32 3, %v1000_v32  ;;  %vm692_vm4 = vcmp.lt.s32.totalorder %v691_v46, 2 }
  0xfd   : > { %v668_v63 = vmul.f32 %v667_v57, %v665_v56  ;;  %vm693_vm5 = vcmp.eq.s32.totalorder %v691_v46, 0  ;;  %vm696_vm6 = vcmp.eq.s32.totalorder %v691_v46, 2 }
  0xfe   : > { %v527_v30 = vadd.f32 1.0, %v526_v48  ;;  %v534_v53 = vadd.f32 1.0, %v533_v49  ;;  %vm1002_vm7 = vcmp.lt.s32.totalorder %v1001_v51, 2  ;;  %vm1003_vm8 = vcmp.eq.s32.totalorder %v1001_v51, 0 }
  0xff   : > { %v669_v2 = vxor.u32 2147483648, %v668_v63  ;;  %vm1006_vm9 = vcmp.eq.s32.totalorder %v1001_v51, 2 }
 0x100   : > { %v535_v21 = vmul.f32 %v534_v53, %v519_v14  ;;  %v543_v60 = vxor.u32 2147483648, %v527_v30 }
 0x101   : > { %v670_v44 = vsel %vm549_vm12, %v669_v2, %v668_v63 }
 0x102   : > { %v540_v0 = vxor.u32 2147483648, %v535_v21  ;;  %v544_v4 = vsel %vm542_vm0, %v543_v60, %v535_v21  ;;  %v853_v9 = vsel %vm851_vm3, %v543_v60, %v535_v21  ;;  %v673_v16 = vsel %vm1882_vm15, %v1717_v35, %v670_v44 }
 0x103   : > { %v675_v23 = vmul.f32 %v673_v16, %v673_v16 }
 0x104   : > { %v541_v33 = vsel %vm539_vm14, %v527_v30, %v540_v0  ;;  %v850_v13 = vsel %vm848_vm2, %v527_v30, %v540_v0 }
 0x105   : > { %v545_v10 = vsel %vm538_vm13, %v541_v33, %v544_v4  ;;  %v854_v43 = vsel %vm847_vm1, %v850_v13, %v853_v9  ;;  %v676_v45 = vmul.f32 -0.001358992, %v675_v23  ;;  %v683_v59 = vmul.f32 -0.00019511016, %v675_v23  ;;  %v1041_v33 = vpop.permute.xlu2 %1040  ;;  %v1063_v4 = vpop.permute.xlu1 %1062 }
 0x106   : > { %v546_v14 = vsel %vm536_vm11, nan, %v545_v10  ;;  %v855_v15 = vsel %vm536_vm11, nan, %v854_v43 }
 0x107   : > { %v1028_v24 = vmul.f32 %v1877_v41, %v855_v15  ;;  %v1042_v27 = vmul.f32 %v1692_v5, %v546_v14  ;;  %v1064_v29 = vmul.f32 %v1698_v7, %v546_v14  ;;  %v1030_v20 = vmul.f32 %v1027_v12, %v855_v15 }
 0x108   : > { %v677_v40 = vadd.f32 0.041655596, %v676_v45  ;;  %v684_v1 = vadd.f32 0.008332121, %v683_v59 }
 0x109   : > { %v1044_v31 = vmul.f32 %v1861_v18, %v1028_v24  ;;  %v1066_v34 = vmul.f32 %v1057_v19, %v1028_v24  ;;  %v1048_v36 = vmul.f32 %v1039_v25, %v1030_v20  ;;  %v1070_v38 = vmul.f32 %v1061_v26, %v1030_v20 }
 0x10a   : > { %v678_v62 = vmul.f32 %v677_v40, %v675_v23  ;;  %v685_v3 = vmul.f32 %v684_v1, %v675_v23 }
 0x10b   : > { %v1046_v39 = vadd.f32 %v1044_v31, %v1042_v27  ;;  %v1068_v5 = vadd.f32 %v1066_v34, %v1064_v29 }
 0x10c   : > { %v679_v22 = vadd.f32 -0.4999988, %v678_v62  ;;  %v686_v18 = vadd.f32 -0.16666654, %v685_v3 }
 0x10d   : > { %v1050_v7 = vadd.f32 %v1048_v36, %v1046_v39  ;;  %v1072_v50 = vadd.f32 %v1070_v38, %v1068_v5 }
 0x10e   : > { %v680_v42 = vmul.f32 %v679_v22, %v675_v23  ;;  %v687_v48 = vmul.f32 %v686_v18, %v675_v23 }
 0x10f   : > { %1052 = vst [vmem:[%s1908_s28] sm:$0xff] %v1050_v7 }
 0x110   : > { %1074 = vst [vmem:[%s1912_s9] sm:$0xff] %v1072_v50  ;;  %v681_v49 = vadd.f32 1.0, %v680_v42  ;;  %v688_v17 = vadd.f32 1.0, %v687_v48 }
 0x112   : > { %v689_v30 = vmul.f32 %v688_v17, %v673_v16  ;;  %v697_v53 = vxor.u32 2147483648, %v681_v49 }
 0x114   : > { %v694_v54 = vxor.u32 2147483648, %v689_v30  ;;  %v698_v57 = vsel %vm696_vm6, %v697_v53, %v689_v30  ;;  %v1008_v21 = vsel %vm1006_vm9, %v697_v53, %v689_v30 }
 0x116   : > { %v695_v56 = vsel %vm693_vm5, %v681_v49, %v694_v54  ;;  %v1005_v58 = vsel %vm1003_vm8, %v681_v49, %v694_v54 }
 0x117   : > { %v699_v60 = vsel %vm692_vm4, %v695_v56, %v698_v57  ;;  %v1009_v61 = vsel %vm1002_vm7, %v1005_v58, %v1008_v21 }
 0x118   : > { %v700_v63 = vsel %vm690_vm10, nan, %v699_v60  ;;  %v1010_v0 = vsel %vm690_vm10, nan, %v1009_v61 }
 0x119   : > { %v1029_v2 = vmul.f32 %v1877_v41, %v1010_v0  ;;  %v1031_v55 = vmul.f32 %v1027_v12, %v1010_v0  ;;  %v1043_v13 = vmul.f32 %v1694_v6, %v700_v63  ;;  %v1065_v9 = vmul.f32 %v1701_v8, %v700_v63 }
 0x11b   : > { %v1045_v35 = vmul.f32 %v1870_v37, %v1029_v2  ;;  %v1067_v10 = vmul.f32 %v1872_v52, %v1029_v2  ;;  %v1049_v44 = vmul.f32 %v1041_v33, %v1031_v55  ;;  %v1071_v6 = vmul.f32 %v1063_v4, %v1031_v55 }
 0x11d   : > { %v1047_v41 = vadd.f32 %v1045_v35, %v1043_v13  ;;  %v1069_v43 = vadd.f32 %v1067_v10, %v1065_v9 }
 0x11f   : > { %v1051_v8 = vadd.f32 %v1049_v44, %v1047_v41  ;;  %v1073_v37 = vadd.f32 %v1071_v6, %v1069_v43 }
 0x121   : > { %1053 = vst [vmem:[%s1908_s28 + $0x8] sm:$0xff] %v1051_v8 }
 0x122   : > { %1075 = vst [vmem:[%s1912_s9 + $0x8] sm:$0xff] %v1073_v37 }
 0x123   : > { %1462 = shalt.err (!%p1459_p0)
}
 0x124   : > { %s1566_s28 = smov 128   ;;  %s1567_s9 = smov 8  }
 0x125   : > { %1319 = dma.vmem_to_hbm [thread:$0]  (%p1649_p9), %s1930_s12, 256, %s1099_s24, %s1077_s27, %s1566_s28, %s1566_s28, %s1567_s9  }
 0x126   : > { %s1082_s17 = scalar_lea.sflag [#allocation7], %s1672_s29  ;;  %s1477_s13 = sshra.s32 %s1935_s25, 4  ;;  %s1478_s13 = int_to_ptr.hbm [resolvable:$true] %s1477_s13 }
 0x127   : > { %s1479_s14 = scalar_lea.hbm %s1478_s13, 16  ;;  %s1483_s15 = scalar_lea.hbm %s1992_s5, 32 }
 0x128   : > { %p1480_p1 = scmp.ne.s32.totalorder %s1478_s13, %s1479_s14  ;;  %p1484_p4 = scmp.lt.s32.totalorder %s1478_s13, %s1992_s5 }
 0x129   : > { %p1485_p5 = scmp.lt.s32.totalorder %s1483_s15, %s1479_s14 }
 0x12a   : > { %p1481_p2 = pnand %p1480_p1, %p1649_p9 }
 0x12b   : > { %p1486_p6 = por %p1485_p5, %p1484_p4 }
 0x12c   : > { %p1482_p3 = pneg %p1481_p2 }
 0x12e   : > { %p1487_p7 = pnand %p1486_p6, %p1482_p3 }
 0x130   : > { %1490 = shalt.err (!%p1487_p7)
}
 0x131   : > { %1320 = dma.vmem_to_hbm [thread:$0]  (%p1649_p9), %s1932_s21, 256, %s1935_s25, %s1082_s17, %s1566_s28, %s1566_s28, %s1567_s9  }
 0x132 PF: > { %s1132_s29 = sand.u32 1, %s1529_s18   ;;  %p1328_p8 = pnand %p1280_p12, %p1656_p11 }
 0x133   : > { %s1133_s12 = scalar_lea.sflag [#allocation4], %s1132_s29 }
 0x134   : > { %p1329_p10 = pneg %p1328_p8 }
 0x136   : > { %1520 = dma.done.wait (%p1329_p10), %s1133_s12, 256  }
 0x137   : > { %1522 = vsyncadd (%p1329_p10), %s1133_s12, 4294967040  ;;  %s1143_s24 = scalar_lea.sflag [#allocation7], %s1132_s29 }
 0x138   : > { %1524 = dma.done.wait (%p1329_p10), %s1143_s24, 256  }
 0x139   : > { %1526 = vsyncadd (%p1329_p10), %s1143_s24, 4294967040  ;;  %s25_s23 = sadd.s32 1, %s1549_s23   ;;  %s2003_s18 = smov %s1533_s19 }
 0x13a   : > { %p22_p13 = scmp.ge.s32.totalorder %s25_s23, 4   ;;  %s2004_s19 = smov %s1537_s20 }
 0x13b   : > { %s2005_s20 = smov %s1654_s7  ;;  %s2006_s21 = smov %s1545_s22 }
 0x13c   : > { %s2007_s22 = smov %s2009_s26  ;;  %24 = sbr.rel (!%p22_p13) target bundleno = 8 (0x8), region = 104 }
 0x141   :  { %1149 = vsyncpa [#allocation3], 1 }
 0x142   :  { %1151 = vsyncpa [#allocation3 + $0x1], 1 }
 0x143   :  { %1152 = vsyncpa [#allocation4], 1 }
 0x144   :  { %1154 = vsyncpa [#allocation4 + $0x1], 1 }
 0x145   :  { %1155 = vsyncpa [#allocation7], 1 }
 0x146   :  { %1157 = vsyncpa [#allocation7 + $0x1], 1 }

</bundles_post_ra>
